<compile_context>
chip_gen: v7x
topology: tpu7x:2x2x1
jax: 0.10.0
libtpu: 0.0.40
codegen_flags: <defaults>
</compile_context>

<pallas_src>
import functools

import jax
import jax.numpy as jnp
from jax.experimental import pallas as pl
from jax.experimental.pallas import tpu as pltpu

EPS = 1e-5  # nn.LayerNorm default
_MIB = 1024 * 1024


def _round_up(n: int, m: int) -> int:
    return (n + m - 1) // m * m


@functools.lru_cache(maxsize=1)
def _tpu_generation_info():
    """Returns (vmem_capacity_bytes, is_v5) with conservative fallbacks."""
    kind = ""
    try:
        kind = jax.devices()[0].device_kind.lower()
    except Exception:
        pass
    is_v5 = "v5" in kind
    cap = None
    try:
        cap = int(pltpu.get_tpu_info().vmem_capacity_bytes)
    except Exception:
        cap = None
    if cap is None:
        # v5e/v6e have 128 MiB VMEM per TensorCore; assume 64 MiB (v7x) otherwise.
        cap = 128 * _MIB if ("v5" in kind or "v6" in kind) else 64 * _MIB
    return cap, is_v5


def _prenorm_residual_kernel(x_ref, g_ref, b_ref, w1_ref, b1_ref, w2_ref, b2_ref,
                             o_ref, *, bf16_gelu):
    # x_ref: (TM, D) row tile. Weights are full, single-buffered resident VMEM (bf16).
    x = x_ref[...].astype(jnp.float32)

    # ---- LayerNorm over last dim (f32) ----
    mean = jnp.mean(x, axis=-1, keepdims=True)
    centered = x - mean
    var = jnp.mean(centered * centered, axis=-1, keepdims=True)
    xn = centered * jax.lax.rsqrt(var + EPS)
    xn = xn * g_ref[...] + b_ref[...]                 # (TM, D) * (1, D) + (1, D)

    # ---- fn: Linear -> GELU (tanh approx) -> Linear ----
    # bf16 operands into the MXU, f32 accumulation; (1, H)/(1, D) bias rows broadcast
    # implicitly (sublane broadcast, no materialized temporaries).
    h = jnp.dot(xn.astype(jnp.bfloat16), w1_ref[...],
                preferred_element_type=jnp.float32) + b1_ref[...]

    # TODO(synk): PyTorch nn.GELU() defaults to exact erf; tanh approximation used here.
    if bf16_gelu:
        hb = h.astype(jnp.bfloat16)
        g = 0.5 * hb * (1.0 + jnp.tanh(0.7978845608028654 *
                                       (hb + 0.044715 * hb * hb * hb)))
        g = g.astype(jnp.bfloat16)
    else:
        g = 0.5 * h * (1.0 + jnp.tanh(0.7978845608028654 *
                                      (h + 0.044715 * h * h * h)))
        g = g.astype(jnp.bfloat16)

    y = jnp.dot(g, w2_ref[...], preferred_element_type=jnp.float32) + b2_ref[...]

    # ---- residual (f32 accumulation, output in x's dtype) ----
    o_ref[...] = (y + x).astype(o_ref.dtype)


@functools.partial(jax.jit, static_argnames=("tile_rows",))
def prenorm_residual(x, gamma, beta, w1, b1, w2, b2, *, tile_rows=None):
    B, S, D = x.shape
    H = w1.shape[1]
    N = B * S

    vmem_cap, is_v5 = _tpu_generation_info()
    bf16_gelu = not is_v5   # v6e/v7x have bf16 VPU/EUP; v5e does not.

    if tile_rows is None:
        # Big tiles amortize the ~0.35 us per-grid-step overhead; 128 MiB chips
        # (v5e/v6e) have room for 512-row tiles, v7x (64 MiB) stays at 256.
        tile_rows = 512 if vmem_cap >= 96 * _MIB else 256

    # Effective row tile: use the big tile when there is enough work for >= 2 grid
    # steps; otherwise split what we have into (up to) 2 tiles rounded to 8 rows.
    if N >= 2 * tile_rows:
        tm = tile_rows
    else:
        tm = min(_round_up(N, 8), max(8, _round_up(pl.cdiv(N, 2), 8)))
    n_pad = _round_up(N, tm)

    x2d = x.reshape(N, D)
    if n_pad != N:
        # NOTE: padded rows are NOT zeros after LayerNorm (var=0 -> rsqrt(eps) ~ 316);
        # they stay finite, ride along through the MLP, and are sliced off below.
        x2d = jnp.pad(x2d, ((0, n_pad - N), (0, 0)))

    gamma2d = gamma.reshape(1, D).astype(jnp.float32)
    beta2d = beta.reshape(1, D).astype(jnp.float32)
    b1_2d = b1.reshape(1, H).astype(jnp.float32)
    b2_2d = b2.reshape(1, D).astype(jnp.float32)
    w1_bf = w1.astype(jnp.bfloat16)
    w2_bf = w2.astype(jnp.bfloat16)

    # VMEM working-set estimate: double-buffered x/out row tiles, SINGLE-buffered
    # resident bf16 weights + f32 bias/gamma rows, plus in-kernel f32 intermediates.
    xbytes = x.dtype.itemsize
    est_bytes = (
        2 * 2 * tm * D * xbytes          # x tile + out tile, double-buffered
        + (D * H + H * D) * 2            # bf16 weights, single-buffered (Buffered(1))
        + (3 * D + H) * 4                # gamma, beta, b1, b2 (f32 rows)
        + tm * H * 4 + 2 * tm * D * 4    # h + xn/y intermediates (f32)
    )
    # Always set the scoped-VMEM limit explicitly (v5e's default is only 16 MiB);
    # cap at 75% of physical capacity to leave Mosaic internal-scratch headroom
    # (~48 MiB on v7x, ~96 MiB on v5e/v6e).
    vmem_limit = int(min(vmem_cap * 3 // 4,
                         max(_round_up(int(est_bytes * 1.5), _MIB), 32 * _MIB)))

    def const_spec(shape):
        # Constant across the grid -> single pipeline buffer (no wasted second copy).
        return pl.BlockSpec(shape, lambda i: (0, 0), pipeline_mode=pl.Buffered(1))

    kernel = functools.partial(_prenorm_residual_kernel, bf16_gelu=bf16_gelu)

    out2d = pl.pallas_call(
        kernel,
        out_shape=jax.ShapeDtypeStruct((n_pad, D), x.dtype),
        grid_spec=pltpu.PrefetchScalarGridSpec(
            num_scalar_prefetch=0,
            grid=(n_pad // tm,),
            in_specs=[
                pl.BlockSpec((tm, D), lambda i: (i, 0)),  # x rows (double-buffered)
                const_spec((1, D)),   # gamma
                const_spec((1, D)),   # beta
                const_spec((D, H)),   # w1 (bf16)
                const_spec((1, H)),   # b1
                const_spec((H, D)),   # w2 (bf16)
                const_spec((1, D)),   # b2
            ],
            out_specs=pl.BlockSpec((tm, D), lambda i: (i, 0)),
        ),
        compiler_params=pltpu.CompilerParams(
            dimension_semantics=("parallel",),
            vmem_limit_bytes=vmem_limit,
        ),
    )(x2d, gamma2d, beta2d, w1_bf, b1_2d, w2_bf, b2_2d)

    if n_pad != N:
        out2d = out2d[:N]
    return out2d.reshape(B, S, D)


def _reference(x, gamma, beta, w1, b1, w2, b2, *, bf16_gelu):
    # Mirrors the kernel's numerics (bf16 MXU operands, bf16-or-f32 GELU, f32 LN /
    # residual). NOTE: this is NOT a pure-f32 PyTorch-exact reference; the tolerance
    # below validates bf16-level agreement only.
    xf = x.astype(jnp.float32)
    mean = jnp.mean(xf, axis=-1, keepdims=True)
    var = jnp.mean((xf - mean) ** 2, axis=-1, keepdims=True)
    xn = (xf - mean) * jax.lax.rsqrt(var + EPS) * gamma + beta
    h = jnp.dot(xn.astype(jnp.bfloat16), w1.astype(jnp.bfloat16),
                preferred_element_type=jnp.float32) + b1
    if bf16_gelu:
        h = h.astype(jnp.bfloat16)
    g = 0.5 * h * (1.0 + jnp.tanh(0.7978845608028654 * (h + 0.044715 * h ** 3)))
    y = jnp.dot(g.astype(jnp.bfloat16), w2.astype(jnp.bfloat16),
                preferred_element_type=jnp.float32) + b2
    return (y + xf).astype(x.dtype)


if __name__ == "__main__":
    key = jax.random.PRNGKey(0)
    B, S, D, H = 2, 8, 128, 256   # small, lane-dense (D and H multiples of 128)

    k_x, k_w1, k_b1, k_w2, k_b2 = jax.random.split(key, 5)
    x = jax.random.normal(k_x, (B, S, D), dtype=jnp.float32)

    # LayerNorm params: ones/zeros (PyTorch default); Linear: small normals.
    gamma = jnp.ones((D,), jnp.float32)
    beta = jnp.zeros((D,), jnp.float32)
    w1 = jax.random.normal(k_w1, (D, H), jnp.float32) * (1.0 / (D ** 0.5))
    b1 = jax.random.normal(k_b1, (H,), jnp.float32) * 0.01
    w2 = jax.random.normal(k_w2, (H, D), jnp.float32) * (1.0 / (H ** 0.5))
    b2 = jax.random.normal(k_b2, (D,), jnp.float32) * 0.01

    out = prenorm_residual(x, gamma, beta, w1, b1, w2, b2)
    out = jax.block_until_ready(out)

    _, _is_v5 = _tpu_generation_info()
    ref = _reference(x, gamma, beta, w1, b1, w2, b2, bf16_gelu=not _is_v5)
    assert out.shape == (B, S, D)
    assert jnp.allclose(out, ref, atol=2e-2, rtol=2e-2), "mismatch vs JAX reference"

    print("KERNEL_OK")
</pallas_src>

<mosaic_0001>
module attributes {stable_mosaic.version = 11 : i64} {
  func.func @_prenorm_residual_kernel(%arg0: i32, %arg1: memref<8x128xf32, #tpu.memory_space<vmem>>, %arg2: memref<1x128xf32, #tpu.memory_space<vmem>>, %arg3: memref<1x128xf32, #tpu.memory_space<vmem>>, %arg4: memref<128x256xbf16, #tpu.memory_space<vmem>>, %arg5: memref<1x256xf32, #tpu.memory_space<vmem>>, %arg6: memref<256x128xbf16, #tpu.memory_space<vmem>>, %arg7: memref<1x128xf32, #tpu.memory_space<vmem>>, %arg8: memref<8x128xf32, #tpu.memory_space<vmem>>) attributes {dimension_semantics = [#tpu.dimension_semantics<parallel>], iteration_bounds = array<i64: 2>, scalar_prefetch = 0 : i64, scratch_operands = 0 : i64, tpu.core_type = #tpu.core_type<tc>, window_params = [{transform_indices = @transform_0, window_bounds = array<i64: 8, 128>}, {pipeline_mode = #tpu.pipeline_mode<synchronous>, transform_indices = @transform_1, window_bounds = array<i64: 1, 128>}, {pipeline_mode = #tpu.pipeline_mode<synchronous>, transform_indices = @transform_2, window_bounds = array<i64: 1, 128>}, {pipeline_mode = #tpu.pipeline_mode<synchronous>, transform_indices = @transform_3, window_bounds = array<i64: 128, 256>}, {pipeline_mode = #tpu.pipeline_mode<synchronous>, transform_indices = @transform_4, window_bounds = array<i64: 1, 256>}, {pipeline_mode = #tpu.pipeline_mode<synchronous>, transform_indices = @transform_5, window_bounds = array<i64: 256, 128>}, {pipeline_mode = #tpu.pipeline_mode<synchronous>, transform_indices = @transform_6, window_bounds = array<i64: 1, 128>}, {transform_indices = @transform_7, window_bounds = array<i64: 8, 128>}]} {
    %c0 = arith.constant 0 : index
    %c0_0 = arith.constant 0 : index
    %0 = vector.load %arg1[%c0, %c0_0] : memref<8x128xf32, #tpu.memory_space<vmem>>, vector<8x128xf32>
    %cst = arith.constant dense<0.000000e+00> : vector<8xf32>
    %1 = vector.multi_reduction <add>, %0, %cst [1] : vector<8x128xf32> to vector<8xf32>
    %2 = vector.shape_cast %1 : vector<8xf32> to vector<8x1xf32>
    %cst_1 = arith.constant 1.280000e+02 : f32
    %3 = vector.broadcast %cst_1 : f32 to vector<8x1xf32>
    %4 = arith.divf %2, %3 : vector<8x1xf32>
    %5 = vector.broadcast %4 : vector<8x1xf32> to vector<8x128xf32>
    %6 = arith.subf %0, %5 : vector<8x128xf32>
    %7 = arith.mulf %6, %6 : vector<8x128xf32>
    %cst_2 = arith.constant dense<0.000000e+00> : vector<8xf32>
    %8 = vector.multi_reduction <add>, %7, %cst_2 [1] : vector<8x128xf32> to vector<8xf32>
    %9 = vector.shape_cast %8 : vector<8xf32> to vector<8x1xf32>
    %cst_3 = arith.constant 1.280000e+02 : f32
    %10 = vector.broadcast %cst_3 : f32 to vector<8x1xf32>
    %11 = arith.divf %9, %10 : vector<8x1xf32>
    %cst_4 = arith.constant 9.99999974E-6 : f32
    %12 = vector.broadcast %cst_4 : f32 to vector<8x1xf32>
    %13 = arith.addf %11, %12 : vector<8x1xf32>
    %14 = math.rsqrt %13 : vector<8x1xf32>
    %15 = vector.broadcast %14 : vector<8x1xf32> to vector<8x128xf32>
    %16 = arith.mulf %6, %15 : vector<8x128xf32>
    %c0_5 = arith.constant 0 : index
    %c0_6 = arith.constant 0 : index
    %17 = vector.load %arg2[%c0_5, %c0_6] : memref<1x128xf32, #tpu.memory_space<vmem>>, vector<1x128xf32>
    %18 = vector.broadcast %17 : vector<1x128xf32> to vector<8x128xf32>
    %19 = arith.mulf %16, %18 : vector<8x128xf32>
    %c0_7 = arith.constant 0 : index
    %c0_8 = arith.constant 0 : index
    %20 = vector.load %arg3[%c0_7, %c0_8] : memref<1x128xf32, #tpu.memory_space<vmem>>, vector<1x128xf32>
    %21 = vector.broadcast %20 : vector<1x128xf32> to vector<8x128xf32>
    %22 = arith.addf %19, %21 : vector<8x128xf32>
    %23 = arith.truncf %22 : vector<8x128xf32> to vector<8x128xbf16>
    %c0_9 = arith.constant 0 : index
    %c0_10 = arith.constant 0 : index
    %24 = vector.load %arg4[%c0_9, %c0_10] : memref<128x256xbf16, #tpu.memory_space<vmem>>, vector<128x256xbf16>
    %cst_11 = arith.constant dense<0.000000e+00> : vector<8x256xf32>
    %25 = tpu.matmul %23, %24, %cst_11 {dimension_numbers = #tpu.dot_dimension_numbers<[1], [0], [0], [1], [0, 0, 1, 1], [], []>} : vector<8x128xbf16>, vector<128x256xbf16>, vector<8x256xf32> -> vector<8x256xf32>
    %c0_12 = arith.constant 0 : index
    %c0_13 = arith.constant 0 : index
    %26 = vector.load %arg5[%c0_12, %c0_13] : memref<1x256xf32, #tpu.memory_space<vmem>>, vector<1x256xf32>
    %27 = vector.broadcast %26 : vector<1x256xf32> to vector<8x256xf32>
    %28 = arith.addf %25, %27 : vector<8x256xf32>
    %29 = arith.truncf %28 : vector<8x256xf32> to vector<8x256xbf16>
    %cst_14 = arith.constant 5.000000e-01 : bf16
    %30 = vector.broadcast %cst_14 : bf16 to vector<8x256xbf16>
    %31 = arith.mulf %30, %29 : vector<8x256xbf16>
    %cst_15 = arith.constant 4.467770e-02 : bf16
    %32 = vector.broadcast %cst_15 : bf16 to vector<8x256xbf16>
    %33 = arith.mulf %32, %29 : vector<8x256xbf16>
    %34 = arith.mulf %33, %29 : vector<8x256xbf16>
    %35 = arith.mulf %34, %29 : vector<8x256xbf16>
    %36 = arith.addf %29, %35 : vector<8x256xbf16>
    %cst_16 = arith.constant 7.968750e-01 : bf16
    %37 = vector.broadcast %cst_16 : bf16 to vector<8x256xbf16>
    %38 = arith.mulf %37, %36 : vector<8x256xbf16>
    %39 = math.tanh %38 : vector<8x256xbf16>
    %cst_17 = arith.constant 1.000000e+00 : bf16
    %40 = vector.broadcast %cst_17 : bf16 to vector<8x256xbf16>
    %41 = arith.addf %40, %39 : vector<8x256xbf16>
    %42 = arith.mulf %31, %41 : vector<8x256xbf16>
    %c0_18 = arith.constant 0 : index
    %c0_19 = arith.constant 0 : index
    %43 = vector.load %arg6[%c0_18, %c0_19] : memref<256x128xbf16, #tpu.memory_space<vmem>>, vector<256x128xbf16>
    %cst_20 = arith.constant dense<0.000000e+00> : vector<8x128xf32>
    %44 = tpu.matmul %42, %43, %cst_20 {dimension_numbers = #tpu.dot_dimension_numbers<[1], [0], [0], [1], [0, 0, 1, 1], [], []>} : vector<8x256xbf16>, vector<256x128xbf16>, vector<8x128xf32> -> vector<8x128xf32>
    %c0_21 = arith.constant 0 : index
    %c0_22 = arith.constant 0 : index
    %45 = vector.load %arg7[%c0_21, %c0_22] : memref<1x128xf32, #tpu.memory_space<vmem>>, vector<1x128xf32>
    %46 = vector.broadcast %45 : vector<1x128xf32> to vector<8x128xf32>
    %47 = arith.addf %44, %46 : vector<8x128xf32>
    %48 = arith.addf %47, %0 : vector<8x128xf32>
    %c0_23 = arith.constant 0 : index
    %c0_24 = arith.constant 0 : index
    %49 = vector.load %arg8[%c0_23, %c0_24] : memref<8x128xf32, #tpu.memory_space<vmem>>, vector<8x128xf32>
    tpu.vector_store %arg8[%c0_23, %c0_24], %48 {strides = array<i32>} : memref<8x128xf32, #tpu.memory_space<vmem>>, vector<8x128xf32>,
    return
  }
  func.func @transform_0(%arg0: i32) -> (i32, i32) {
    %c0_i32 = arith.constant 0 : i32
    %c0_i32_0 = arith.constant 0 : i32
    return %arg0, %c0_i32 : i32, i32
  }
  func.func @transform_1(%arg0: i32) -> (i32, i32) {
    %c0_i32 = arith.constant 0 : i32
    %c0_i32_0 = arith.constant 0 : i32
    %c0_i32_1 = arith.constant 0 : i32
    return %c0_i32, %c0_i32_0 : i32, i32
  }
  func.func @transform_2(%arg0: i32) -> (i32, i32) {
    %c0_i32 = arith.constant 0 : i32
    %c0_i32_0 = arith.constant 0 : i32
    %c0_i32_1 = arith.constant 0 : i32
    return %c0_i32, %c0_i32_0 : i32, i32
  }
  func.func @transform_3(%arg0: i32) -> (i32, i32) {
    %c0_i32 = arith.constant 0 : i32
    %c0_i32_0 = arith.constant 0 : i32
    %c0_i32_1 = arith.constant 0 : i32
    return %c0_i32, %c0_i32_0 : i32, i32
  }
  func.func @transform_4(%arg0: i32) -> (i32, i32) {
    %c0_i32 = arith.constant 0 : i32
    %c0_i32_0 = arith.constant 0 : i32
    %c0_i32_1 = arith.constant 0 : i32
    return %c0_i32, %c0_i32_0 : i32, i32
  }
  func.func @transform_5(%arg0: i32) -> (i32, i32) {
    %c0_i32 = arith.constant 0 : i32
    %c0_i32_0 = arith.constant 0 : i32
    %c0_i32_1 = arith.constant 0 : i32
    return %c0_i32, %c0_i32_0 : i32, i32
  }
  func.func @transform_6(%arg0: i32) -> (i32, i32) {
    %c0_i32 = arith.constant 0 : i32
    %c0_i32_0 = arith.constant 0 : i32
    %c0_i32_1 = arith.constant 0 : i32
    return %c0_i32, %c0_i32_0 : i32, i32
  }
  func.func @transform_7(%arg0: i32) -> (i32, i32) {
    %c0_i32 = arith.constant 0 : i32
    %c0_i32_0 = arith.constant 0 : i32
    return %arg0, %c0_i32 : i32, i32
  }
}

</mosaic_0001>

<bundles_post_ra>
// kernel: prenorm_residual.1
= control target key start
LH: loop header
LB: loop body
LE: loop exit
PB: predicated region body
PF: predicated region fallthrough
CT: control target
= control target key end

     0   :  { %12 = vsyncpa [#allocation3], 0  ;;  %s1200_s0 = inlined_call_operand.vmem [shape: f32[16,128], index: 0, kind: input, shape index: {}]   ;;  %s1201_s1 = inlined_call_operand.vmem [shape: f32[1,128], index: 1, kind: input, shape index: {}]   ;;  %s1202_s2 = inlined_call_operand.vmem [shape: f32[1,128], index: 2, kind: input, shape index: {}]   ;;  %s1203_s3 = inlined_call_operand.vmem [shape: bf16[128,256], index: 3, kind: input, shape index: {}]   ;;  %s1204_s4 = inlined_call_operand.vmem [shape: f32[1,256], index: 4, kind: input, shape index: {}]   ;;  %s1205_s5 = inlined_call_operand.vmem [shape: bf16[256,128], index: 5, kind: input, shape index: {}]   ;;  %s1206_s6 = inlined_call_operand.vmem [shape: f32[1,128], index: 6, kind: input, shape index: {}]   ;;  %s1207_s7 = inlined_call_operand.hbm [shape: f32[16,128], index: 7, kind: output, shape index: {}]  }
   0x1   :  { %14 = vsyncpa [#allocation3 + $0x1], 0  ;;  %s987_s24 = smov 0   ;;  %s989_s25 = smov 0  }
   0x2   :  { %s991_s26 = smov 0   ;;  %s993_s27 = smov 0  }
   0x3 LB: > { %s1008_s28 = sadd.s32 4294967295, %s943_s27   ;;  %s728_s29 = sadd.s32 4294967294, %s943_s27   ;;  %s943_s27 = sphi %s993_s27, %s1213_s27   ;;  %s939_s26 = sphi %s991_s26, %s1212_s26   ;;  %s935_s25 = sphi %s989_s25, %s1211_s25   ;;  %s931_s24 = sphi %s987_s24, %s1210_s24  }
   0x4   : > { %s1012_s30 = sadd.s32 1, %s943_s27   ;;  %s179_s8 = sadd.s32 1, %s939_s26 }
   0x5   : > { %s176_s9 = ssub.s32 %s943_s27, %s1012_s30  ;;  %p189_p0 = scmp.ne.s32.totalorder %s939_s26, %s935_s25 }
   0x6   : > { %p177_p1 = scmp.eq.s32.totalorder %s176_s9, 0  ;;  %p190_p2 = scmp.eq.s32.totalorder %s1008_s28, 1 }
   0x7   : > { %p195_p3 = scmp.ne.s32.totalorder %s935_s25, %s931_s24  ;;  %p196_p4 = scmp.eq.s32.totalorder %s728_s29, 1 }
   0x8   : > { %s1023_s10 = scalar_select %p177_p1, %s939_s26, %s179_s8  }
   0x9   : > { %p1025_p5 = por %p190_p2, %p189_p0  ;;  %p1029_p6 = por %p196_p4, %p195_p3 }
   0xa   : > { %p731_p7 = scmp.ge.s32.totalorder %s943_s27, 1  ;;  %p239_p8 = scmp.lt.s32.totalorder %s943_s27, 3 }
   0xc   : > { %p240_p9 = pnand %p731_p7, %p239_p8 }
   0xd   : > { %p270_p10 = scmp.lt.s32.totalorder (!%p240_p9), %s1008_s28, 1  ;;  %v835_v1 = vld [vmem:[%s1203_s3 + $0x4] ss:$8 sps:$4 sm:$0xff] (!%p240_p9)   ;;  %v837_v2 = vld [vmem:[%s1203_s3] ss:$8 sps:$4 sm:$0xff] (!%p240_p9)   ;;  %v945_v16 = vmov (!%p240_p9), 0   ;;  %v327_v48 = vlaneseq (!%p240_p9) }
   0xe   : > { %243 = sbr.rel (%p240_p9) target bundleno = 816 (0x330), region = 48  ;;  %v838_v3 = vld [vmem:[%s1203_s3 + $0x14] ss:$8 sps:$4 sm:$0xff] (!%p240_p9)   ;;  %417 = vmatprep.subr.bf16.mxu0 (!%p240_p9), %v835_v1  ;;  %v840_v4 = vld [vmem:[%s1203_s3 + $0x10] ss:$8 sps:$4 sm:$0xff] (!%p240_p9)   ;;  %449 = vmatprep.mubr.bf16.mxu0 (!%p240_p9), %v945_v16  ;;  %v859_v32 = vld [vmem:[%s1205_s5 + $0x40] sm:$0xff] (!%p240_p9)  }
   0xf   : > { %418 = vmatpush1.bf16.msra.mxu0 (!%p240_p9), %v837_v2  ;;  %v841_v5 = vld [vmem:[%s1203_s3 + $0x24] ss:$8 sps:$4 sm:$0xff] (!%p240_p9)   ;;  %v843_v10 = vld [vmem:[%s1203_s3 + $0x20] ss:$8 sps:$4 sm:$0xff] (!%p240_p9)   ;;  %v844_v11 = vld [vmem:[%s1203_s3 + $0x34] ss:$8 sps:$4 sm:$0xff] (!%p240_p9)   ;;  %773 = vmatprep.subr.bf16.mxu1 (!%p240_p9), %v859_v32 }
  0x10   : > { %419 = vmatprep.subr.bf16.mxu0 (!%p240_p9), %v838_v3  ;;  %v846_v12 = vld [vmem:[%s1203_s3 + $0x30] ss:$8 sps:$4 sm:$0xff] (!%p240_p9)   ;;  %v847_v13 = vld [vmem:[%s1203_s3 + $0x44] ss:$8 sps:$4 sm:$0xff] (!%p240_p9)   ;;  %v849_v14 = vld [vmem:[%s1203_s3 + $0x40] ss:$8 sps:$4 sm:$0xff] (!%p240_p9)  }
  0x11   : > { %v850_v15 = vld [vmem:[%s1203_s3 + $0x54] ss:$8 sps:$4 sm:$0xff] (!%p240_p9)   ;;  %v852_v17 = vld [vmem:[%s1203_s3 + $0x50] ss:$8 sps:$4 sm:$0xff] (!%p240_p9)   ;;  %v853_v18 = vld [vmem:[%s1203_s3 + $0x64] ss:$8 sps:$4 sm:$0xff] (!%p240_p9)  }
  0x12   : > { %v855_v19 = vld [vmem:[%s1203_s3 + $0x60] ss:$8 sps:$4 sm:$0xff] (!%p240_p9)   ;;  %v856_v20 = vld [vmem:[%s1203_s3 + $0x74] ss:$8 sps:$4 sm:$0xff] (!%p240_p9)   ;;  %v858_v21 = vld [vmem:[%s1203_s3 + $0x70] ss:$8 sps:$4 sm:$0xff] (!%p240_p9)  }
  0x13   : > { %420 = vmatpush1.bf16.msra.mxu0 (!%p240_p9), %v840_v4  ;;  %v734_v26 = vld [vmem:[%s1201_s1] ss:$0 sm:$0xff] (!%p240_p9)  ;;  %v861_v34 = vld [vmem:[%s1205_s5 + $0x48] sm:$0xff] (!%p240_p9)   ;;  %v863_v36 = vld [vmem:[%s1205_s5 + $0x50] sm:$0xff] (!%p240_p9)   ;;  %v328_v49 = vshrl.u32 (!%p240_p9), %v327_v48, 7  ;;  %s267_s18 = sand.u32 (!%p240_p9), 1, %s935_s25  }
  0x14   : > { %421 = vmatprep.subr.bf16.mxu0 (!%p240_p9), %v841_v5  ;;  %v735_v28 = vld [vmem:[%s1202_s2] ss:$0 sm:$0xff] (!%p240_p9)  ;;  %v862_v35 = vld [vmem:[%s1205_s5 + $0x8] sm:$0xff] (!%p240_p9)   ;;  %v864_v37 = vld [vmem:[%s1205_s5 + $0x10] sm:$0xff] (!%p240_p9)   ;;  %s732_s19 = sshll.u32 (!%p240_p9), %s267_s18, 3  ;;  %s770_s22 = sshll.u32 (!%p240_p9), %s1008_s28, 7 }
  0x15   : > { %s271_s13 = scalar_select %p270_p10, %s1008_s28, 1  ;;  %v860_v33 = vld [vmem:[%s1205_s5] sm:$0xff]   ;;  %v865_v38 = vld [vmem:[%s1205_s5 + $0x58] sm:$0xff]   ;;  %v869_v42 = vld [vmem:[%s1205_s5 + $0x68] sm:$0xff]   ;;  %v329_v50 = vsub.s32 0, %v328_v49  ;;  %v333_v52 = vsub.s32 1, %v328_v49 }
  0x16   : > { %774 = vmatpush3.bf16.msra.mxu1 %v860_v33  ;;  %v866_v39 = vld [vmem:[%s1205_s5 + $0x18] sm:$0xff]   ;;  %v867_v40 = vld [vmem:[%s1205_s5 + $0x60] sm:$0xff]   ;;  %v870_v43 = vld [vmem:[%s1205_s5 + $0x28] sm:$0xff]   ;;  %s269_s23 = scalar_lea.vmem [#allocation2], %s732_s19  ;;  %s946_s28 = smov [#allocation2]  }
  0x17   : > { %s733_s14 = sshll.u32 %s271_s13, 3  ;;  %422 = vmatpush1.bf16.msra.mxu0 %v843_v10  ;;  %775 = vmatprep.subr.bf16.mxu1 %v861_v34  ;;  %v868_v41 = vld [vmem:[%s1205_s5 + $0x20] sm:$0xff]   ;;  %v871_v44 = vld [vmem:[%s1205_s5 + $0x70] sm:$0xff]   ;;  %v873_v46 = vld [vmem:[%s1205_s5 + $0x78] sm:$0xff]   ;;  %s669_s29 = sshll.u32 %s269_s23, 4  ;;  %s1160_s29 = int_to_ptr.vmem [resolvable:$true] %s669_s29 }
  0x18   : > { %s273_s17 = scalar_lea.vmem %s1200_s0, %s733_s14  ;;  %423 = vmatprep.subr.bf16.mxu0 %v844_v11  ;;  %v872_v45 = vld [vmem:[%s1205_s5 + $0x30] sm:$0xff]   ;;  %v874_v47 = vld [vmem:[%s1205_s5 + $0x38] sm:$0xff]   ;;  %v325_v51 = vld [vmem:[%s1204_s4] sm:$0x3]  ;;  %s1158_s13 = scalar_lea.hbm %s1207_s7, %s770_s22 }
  0x19   : > { %v1040_v0 = vld [vmem:[%s273_s17] sm:$0xff]  ;;  %v330_v53 = vrot.slane %v325_v51, %v329_v50  ;;  %v334_v54 = vrot.slane %v325_v51, %v333_v52  ;;  %s656_s14 = scalar_lea.sflag [#allocation3], %s267_s18  ;;  %s881_s15 = scalar_lea.vmem %s1160_s29, 128 }
  0x1a   : > { %280 = vadd.xlane.f32.xlu0 %v1040_v0  ;;  %776 = vmatpush3.bf16.msra.mxu1 %v862_v35  ;;  %p882_p11 = scmp.ne.s32.totalorder %s1160_s29, %s881_s15  ;;  %s885_s16 = sshll.u32 %s946_s28, 4  ;;  %s886_s16 = int_to_ptr.vmem [resolvable:$false] %s885_s16 }
  0x1b   : > { %424 = vmatpush1.bf16.msra.mxu0 %v846_v12  ;;  %777 = vmatprep.subr.bf16.mxu1 %v863_v36  ;;  %s887_s17 = scalar_lea.vmem %s886_s16, 256  ;;  %p888_p0 = scmp.lt.s32.totalorder %s1160_s29, %s886_s16 }
  0x1c   : > { %425 = vmatprep.subr.bf16.mxu0 %v847_v13  ;;  %p883_p12 = pnand %p882_p11, %p1025_p5  ;;  %p889_p1 = scmp.lt.s32.totalorder %s887_s17, %s881_s15 }
  0x1e   : > { %778 = vmatpush3.bf16.msra.mxu1 %v864_v37  ;;  %p884_p13 = pneg %p883_p12  ;;  %p890_p2 = por %p889_p1, %p888_p0 }
  0x1f   : > { %426 = vmatpush1.bf16.msra.mxu0 %v849_v14  ;;  %779 = vmatprep.subr.bf16.mxu1 %v865_v38 }
  0x20   : > { %427 = vmatprep.subr.bf16.mxu0 %v850_v15  ;;  %p891_p3 = pnand %p890_p2, %p884_p13 }
  0x22   : > { %780 = vmatpush3.bf16.msra.mxu1 %v866_v39 }
  0x23   : > { %428 = vmatpush1.bf16.msra.mxu0 %v852_v17  ;;  %781 = vmatprep.subr.bf16.mxu1 %v867_v40 }
  0x24   : > { %429 = vmatprep.subr.bf16.mxu0 %v853_v18 }
  0x26   : > { %782 = vmatpush3.bf16.msra.mxu1 %v868_v41 }
  0x27   : > { %430 = vmatpush1.bf16.msra.mxu0 %v855_v19  ;;  %783 = vmatprep.subr.bf16.mxu1 %v869_v42  ;;  %v752_v19 = vld [vmem:[%s1206_s6] ss:$0 sm:$0xff] }
  0x28   : > { %431 = vmatprep.subr.bf16.mxu0 %v856_v20 }
  0x2a   : > { %784 = vmatpush3.bf16.msra.mxu1 %v870_v43 }
  0x2b   : > { %432 = vmatpush1.bf16.msra.mxu0 %v858_v21  ;;  %785 = vmatprep.subr.bf16.mxu1 %v871_v44 }
  0x2e   : > { %786 = vmatpush3.bf16.msra.mxu1 %v872_v45 }
  0x2f   : > { %787 = vmatprep.subr.bf16.mxu1 %v873_v46 }
  0x32   : > { %788 = vmatpush3.bf16.msra.mxu1 %v874_v47 }
  0xa7   : > { %v281_v6 = vpop.xlane.xlu0 %280 }
  0xa8   : > { %v283_v7 = vmul.f32 0.0078125, %v281_v6 }
  0xaa   : > { %v284_v8 = vsub.f32 %v1040_v0, %v283_v7 }
  0xac   : > { %v285_v9 = vmul.f32 %v284_v8, %v284_v8 }
  0xae   : > { %286 = vadd.xlane.f32.xlu0 %v285_v9 }
 0x13b   : > { %v287_v22 = vpop.xlane.xlu0 %286 }
 0x13c   : > { %v288_v23 = vmul.f32 0.0078125, %v287_v22 }
 0x13e   : > { %v289_v24 = vadd.f32 1e-05, %v288_v23 }
 0x140   : > { %875 = vrsqrt.f32 %v289_v24 }
 0x14a   : > { %v876_v25 = vpop.eup %875 }
 0x14b   : > { %v291_v27 = vmul.f32 %v876_v25, %v284_v8 }
 0x14d   : > { %v299_v29 = vmul.f32 %v734_v26, %v291_v27 }
 0x14f   : > { %v307_v30 = vadd.f32 %v735_v28, %v299_v29 }
 0x151   : > { %v308_v31 = vpack.c.bf16 %v307_v30, %v307_v30 }
 0x153   : > { %450 = vmatmul.mubr.bf16.vlgmr.msra.gmra.mrb[0].mxu0 %v308_v31 }
 0x226   : > { %v451_v55 = vpop.f32.mrb[0].mxu0 }
 0x227   : > { %v452_v56 = vadd.f32 %v451_v55, %v330_v53  ;;  %v453_v57 = vpop.f32.mrb[1].mxu0 }
 0x228   : > { %v454_v58 = vadd.f32 %v453_v57, %v334_v54  ;;  %v455_v59 = vpop.f32.mrb[2].mxu0 }
 0x229   : > { %v458_v60 = vpack.c.bf16 %v452_v56, %v452_v56  ;;  %v456_v61 = vpop.f32.mrb[3].mxu0 }
 0x22a   : > { %v459_v62 = vpack.c.bf16 %v454_v58, %v454_v58 }
 0x22b   : > { %v462_v63 = vmul.bf16 1027030327, %v458_v60  ;;  %v460_v15 = vmul.bf16 1056980736, %v458_v60 }
 0x22c   : > { %v463_v1 = vmul.bf16 1027030327, %v459_v62  ;;  %v461_v13 = vmul.bf16 1056980736, %v459_v62 }
 0x22d   : > { %v464_v2 = vmul.bf16 %v462_v63, %v458_v60 }
 0x22e   : > { %v465_v3 = vmul.bf16 %v463_v1, %v459_v62 }
 0x22f   : > { %v466_v4 = vmul.bf16 %v464_v2, %v458_v60 }
 0x230   : > { %v467_v5 = vmul.bf16 %v465_v3, %v459_v62 }
 0x231   : > { %v468_v6 = vadd.bf16 %v466_v4, %v458_v60 }
 0x232   : > { %v469_v7 = vadd.bf16 %v467_v5, %v459_v62 }
 0x233   : > { %v470_v8 = vmul.bf16 1061961548, %v468_v6 }
 0x234   : > { %v471_v9 = vmul.bf16 1061961548, %v469_v7 }
 0x235   : > { %877 = vtanh.bf16 %v470_v8 }
 0x236   : > { %879 = vtanh.bf16 %v471_v9 }
 0x240   : > { %v878_v10 = vpop.eup %877 }
 0x241   : > { %v880_v11 = vpop.eup %879  ;;  %v474_v12 = vadd.bf16 1065369472, %v878_v10 }
 0x242   : > { %v475_v14 = vadd.bf16 1065369472, %v880_v11 }
 0x243   : > { %v476_v17 = vmul.bf16 %v474_v12, %v460_v15 }
 0x244   : > { %v477_v16 = vmul.bf16 %v475_v14, %v461_v13 }
 0x246   : > { %645 = vmatprep.mubr.bf16.mxu1 %v477_v16 }
 0x247   : > { %646 = vmatmul.mubr.bf16.vlgmr.msra.gmra.mrb[0].mxu1 %v476_v17 }
 0x31a   : > { %v789_v18 = vpop.f32.mrb[0].mxu1 }
 0x31b   : > { %v790_v20 = vpop.f32.mrb[1].mxu1 }
 0x31c   : > { %v791_v21 = vadd.f32 %v790_v20, %v789_v18  ;;  %v792_v22 = vpop.f32.mrb[2].mxu1 }
 0x31d   : > { %v793_v23 = vpop.f32.mrb[3].mxu1 }
 0x31e   : > { %v648_v24 = vadd.f32 %v791_v21, %v752_v19 }
 0x320   : > { %v653_v25 = vadd.f32 %v648_v24, %v1040_v0 }
 0x322   : > { %654 = vst [vmem:[%s269_s23] sm:$0xff] %v653_v25 }
 0x323   : > { %894 = shalt.err (!%p891_p3)
}
 0x324   : > { %s895_s18 = scalar_lea.hbm %s1158_s13, 128  ;;  %s899_s21 = scalar_lea.hbm %s1207_s7, 256 }
 0x325   : > { %p896_p4 = scmp.ne.s32.totalorder %s1158_s13, %s895_s18  ;;  %p900_p9 = scmp.lt.u32.totalorder %s1158_s13, %s1207_s7 }
 0x326   : > { %p901_p10 = scmp.lt.u32.totalorder %s899_s21, %s895_s18  ;;  %p903_p12 = scmp.lt.u32.totalorder %s895_s18, %s1158_s13 }
 0x327   : > { %p897_p7 = pnand %p896_p4, %p1025_p5 }
 0x328   : > { %p902_p11 = por %p901_p10, %p900_p9 }
 0x329   : > { %p898_p8 = pneg %p897_p7 }
 0x32a   : > { %p904_p13 = por %p903_p12, %p902_p11 }
 0x32c   : > { %p905_p0 = pnand %p904_p13, %p898_p8 }
 0x32e   : > { %908 = shalt.err (!%p905_p0)
}
 0x32f   : > { %795 = dma.vmem_to_hbm [thread:$0]  (%p1025_p5), %s1160_s29, 128, %s1158_s13, %s656_s14  }
 0x330 PF: > { %p801_p1 = scmp.ge.s32.totalorder %s943_s27, 2  ;;  %s681_s8 = sand.u32 1, %s931_s24  }
 0x331   : > { %s682_s9 = scalar_lea.sflag [#allocation3], %s681_s8 }
 0x332   : > { %p798_p2 = pnand %p801_p1, %p1029_p6 }
 0x334   : > { %926 = dma.done.wait (!%p798_p2), %s682_s9, 128  }
 0x335   : > { %928 = vsyncadd (!%p798_p2), %s682_s9, 4294967168  ;;  %p17_p3 = scmp.ge.s32.totalorder %s1012_s30, 4   ;;  %s1210_s24 = smov %s935_s25 }
 0x336   : > { %s1211_s25 = smov %s939_s26  ;;  %s1212_s26 = smov %s1023_s10 }
 0x337   : > { %s1213_s27 = smov %s1012_s30  ;;  %19 = sbr.rel (!%p17_p3) target bundleno = 3 (0x3), region = 83 }
 0x33e   :  { %687 = vsyncpa [#allocation3], 1 }
 0x33f   :  { %689 = vsyncpa [#allocation3 + $0x1], 1 }

</bundles_post_ra>
